<compile_context>
chip_gen: v6e
topology: v6e:2x2x1
jax: 0.10.0
libtpu: 0.0.40
codegen_flags: <defaults>
</compile_context>

<pallas_src>
import functools

import jax
import jax.numpy as jnp
from jax.experimental import pallas as pl
from jax.experimental.pallas import tpu as pltpu


def _attention_kernel(g_ref, x_ref, w_ref, b_ref, wp_ref, bp_ref, out_ref):
    """Fused attention gate on channels-on-sublane / spatial-on-lane blocks.

      g_ref  : (f_g,        TM)   gate features
      x_ref  : (f_l,        TM)   local features
      w_ref  : (f_int, f_g+f_l)   folded, stacked [Wg ; Wx]^T
      b_ref  : (f_int, 1)         folded bg + bx
      wp_ref : (f_int, 1)         folded psi weight
      bp_ref : (1, 1)             folded psi bias
      out    : (f_l,        TM)
    """
    x = x_ref[...]                                            # (f_l, TM)

    # Single fused projection: [Wg;Wx]^T @ [g;x]  -> (f_int, TM)
    gx = jnp.concatenate([g_ref[...], x], axis=0).astype(jnp.float32)
    h = jnp.dot(w_ref[...], gx, preferred_element_type=jnp.float32) + b_ref[...]
    p = jnp.maximum(h, 0.0)                                   # ReLU

    # psi projection f_int -> 1: weighted sublane reduction (XLU), then sigmoid.
    a = jnp.sum(p * wp_ref[...], axis=0, keepdims=True) + bp_ref[...]   # (1, TM)
    a = jax.nn.sigmoid(a)

    out_ref[...] = (x.astype(jnp.float32) * a).astype(out_ref.dtype)


def _fold_bn(w, b, gamma, beta, mean, var, eps=1e-5):
    """Fold eval-mode BatchNorm into the preceding 1x1x1 conv weights."""
    s = gamma / jnp.sqrt(var + eps)             # (C_out,)
    w_eff = w * s[None, :]                      # (C_in, C_out)
    b_eff = (b - mean) * s + beta               # (C_out,)
    return w_eff, b_eff


@functools.partial(jax.jit, static_argnames=("tile_m",))
def attention_block(g, x, params, tile_m=None):
    """g: (N, f_g, D, H, W), x: (N, f_l, D, H, W)  ->  (N, f_l, D, H, W)."""
    N, f_g, D, H, W = g.shape
    _, f_l, _, _, _ = x.shape
    f_int = params["wg"].shape[1]
    M = D * H * W                               # spatial size per batch item

    # ---- Fold BN into the convs and stack the g/x projections (glue) -------
    wg, bg = _fold_bn(params["wg"], params["bg"], params["g_gamma"], params["g_beta"],
                      params["g_mean"], params["g_var"])
    wx, bx = _fold_bn(params["wx"], params["bx"], params["x_gamma"], params["x_beta"],
                      params["x_mean"], params["x_var"])
    wp, bp = _fold_bn(params["wp"], params["bp"], params["p_gamma"], params["p_beta"],
                      params["p_mean"], params["p_var"])

    w_stack = jnp.concatenate([wg, wx], axis=0).T          # (f_int, f_g+f_l)
    b_stack = (bg + bx).reshape(f_int, 1)                  # (f_int, 1)
    wp_col = wp.reshape(f_int, 1)                          # (f_int, 1)
    bp_s = bp.reshape(1, 1)                                # (1, 1)

    # ---- Free reshapes only: NCDHW -> (N, C, M). No HBM transposes. --------
    g3 = g.reshape(N, f_g, M)
    x3 = x.reshape(N, f_l, M)

    # Lane-dense spatial tile: multiple of 128, as large as sensible
    # (bytes per block stay tiny because the channel counts are tiny).
    if tile_m is None:
        tile_m = min(16384, pl.cdiv(M, 128) * 128)
    grid = (N, pl.cdiv(M, tile_m))            # partial last block is write-masked

    blk = lambda n, m: (n, 0, m)              # batch / spatial tiled operands
    rep = lambda n, m: (0, 0)                 # replicated (whole-array) operands

    out3 = pl.pallas_call(
        _attention_kernel,
        out_shape=jax.ShapeDtypeStruct((N, f_l, M), x.dtype),
        grid=grid,
        in_specs=[
            pl.BlockSpec((None, f_g, tile_m), blk),        # g   (sublane=C, lane=M)
            pl.BlockSpec((None, f_l, tile_m), blk),        # x
            pl.BlockSpec((f_int, f_g + f_l), rep),         # stacked folded weight
            pl.BlockSpec((f_int, 1), rep),                 # folded bias (bg+bx)
            pl.BlockSpec((f_int, 1), rep),                 # folded psi weight
            pl.BlockSpec((1, 1), rep),                     # folded psi bias
        ],
        out_specs=pl.BlockSpec((None, f_l, tile_m), blk),  # lane-dense output
        compiler_params=pltpu.CompilerParams(
            dimension_semantics=("parallel", "parallel"),
            vmem_limit_bytes=32 << 20),
    )(g3, x3, w_stack, b_stack, wp_col, bp_s)

    # Free reshape back to NCDHW.
    return out3.reshape(N, f_l, D, H, W)


def _reference(g, x, params):
    """Pure-JAX reference mirroring the PyTorch forward (norm='bn', eval)."""
    def conv_bn(inp, w, b, gamma, beta, mean, var, eps=1e-5):
        y = jnp.einsum("ncdhw,co->nodhw", inp.astype(jnp.float32), w) + b[None, :, None, None, None]
        y = (y - mean[None, :, None, None, None]) / jnp.sqrt(var + eps)[None, :, None, None, None]
        return y * gamma[None, :, None, None, None] + beta[None, :, None, None, None]

    g1 = conv_bn(g, params["wg"], params["bg"], params["g_gamma"], params["g_beta"],
                 params["g_mean"], params["g_var"])
    x1 = conv_bn(x, params["wx"], params["bx"], params["x_gamma"], params["x_beta"],
                 params["x_mean"], params["x_var"])
    p = jnp.maximum(g1 + x1, 0.0)
    a = conv_bn(p, params["wp"], params["bp"], params["p_gamma"], params["p_beta"],
                params["p_mean"], params["p_var"])
    a = jax.nn.sigmoid(a)
    return x.astype(jnp.float32) * a


def make_params(key, f_g, f_l, f_int):
    ks = jax.random.split(key, 9)
    p = {
        # conv weights stored as (C_in, C_out); torch Conv3d weight is (C_out, C_in, 1,1,1)
        "wg": jax.random.normal(ks[0], (f_g, f_int), jnp.float32) * 0.1,
        "bg": jax.random.normal(ks[1], (f_int,), jnp.float32) * 0.1,
        "wx": jax.random.normal(ks[2], (f_l, f_int), jnp.float32) * 0.1,
        "bx": jax.random.normal(ks[3], (f_int,), jnp.float32) * 0.1,
        "wp": jax.random.normal(ks[4], (f_int, 1), jnp.float32) * 0.1,
        "bp": jax.random.normal(ks[5], (1,), jnp.float32) * 0.1,
        # BatchNorm (eval-mode) params / running stats
        "g_gamma": jnp.ones((f_int,), jnp.float32) + 0.05 * jax.random.normal(ks[6], (f_int,)),
        "g_beta": jnp.zeros((f_int,), jnp.float32) + 0.01,
        "g_mean": 0.1 * jax.random.normal(ks[7], (f_int,), jnp.float32),
        "g_var": jnp.ones((f_int,), jnp.float32) * 0.9,
        "x_gamma": jnp.ones((f_int,), jnp.float32) * 1.05,
        "x_beta": jnp.zeros((f_int,), jnp.float32) - 0.01,
        "x_mean": 0.1 * jax.random.normal(ks[8], (f_int,), jnp.float32),
        "x_var": jnp.ones((f_int,), jnp.float32) * 1.1,
        "p_gamma": jnp.ones((1,), jnp.float32) * 0.95,
        "p_beta": jnp.zeros((1,), jnp.float32) + 0.02,
        "p_mean": jnp.zeros((1,), jnp.float32) + 0.05,
        "p_var": jnp.ones((1,), jnp.float32) * 1.0,
    }
    return p


if __name__ == "__main__":
    # Small shapes consistent with the module: N=2, f_g=f_l=8, f_int=16, D=H=W=8.
    N, f_g, f_l, f_int, D, H, W = 2, 8, 8, 16, 8, 8, 8

    key = jax.random.PRNGKey(0)
    kg, kx, kp = jax.random.split(key, 3)
    g = jax.random.normal(kg, (N, f_g, D, H, W), jnp.float32)
    x = jax.random.normal(kx, (N, f_l, D, H, W), jnp.float32)
    params = make_params(kp, f_g, f_l, f_int)

    # NOTE: inputs may also be bf16 (the kernel accumulates in f32 internally);
    # f32 used here to meet the tight reference tolerance.
    out = attention_block(g, x, params)
    out = jax.block_until_ready(out)

    ref = _reference(g, x, params)
    assert out.shape == (N, f_l, D, H, W)
    assert jnp.allclose(out, ref, atol=1e-4, rtol=1e-4), "mismatch vs reference"

    print("KERNEL_OK")
</pallas_src>

<mosaic_0001>
module attributes {stable_mosaic.version = 11 : i64} {
  func.func @_attention_kernel(%arg0: i32, %arg1: i32, %arg2: memref<1x8x512xf32, #tpu.memory_space<vmem>>, %arg3: memref<1x8x512xf32, #tpu.memory_space<vmem>>, %arg4: memref<16x16xf32, #tpu.memory_space<vmem>>, %arg5: memref<16x1xf32, #tpu.memory_space<vmem>>, %arg6: memref<16x1xf32, #tpu.memory_space<vmem>>, %arg7: memref<1x1xf32, #tpu.memory_space<vmem>>, %arg8: memref<1x8x512xf32, #tpu.memory_space<vmem>>) attributes {dimension_semantics = [#tpu.dimension_semantics<parallel>, #tpu.dimension_semantics<parallel>], iteration_bounds = array<i64: 2, 1>, scalar_prefetch = 0 : i64, scratch_operands = 0 : i64, tpu.core_type = #tpu.core_type<tc>, window_params = [{transform_indices = @transform_0, window_bounds = array<i64: 1, 8, 512>}, {transform_indices = @transform_1, window_bounds = array<i64: 1, 8, 512>}, {pipeline_mode = #tpu.pipeline_mode<synchronous>, transform_indices = @transform_2, window_bounds = array<i64: 16, 16>}, {pipeline_mode = #tpu.pipeline_mode<synchronous>, transform_indices = @transform_3, window_bounds = array<i64: 16, 1>}, {pipeline_mode = #tpu.pipeline_mode<synchronous>, transform_indices = @transform_4, window_bounds = array<i64: 16, 1>}, {pipeline_mode = #tpu.pipeline_mode<synchronous>, transform_indices = @transform_5, window_bounds = array<i64: 1, 1>}, {transform_indices = @transform_6, window_bounds = array<i64: 1, 8, 512>}]} {
    %c0 = arith.constant 0 : index
    %c0_0 = arith.constant 0 : index
    %c0_1 = arith.constant 0 : index
    %0 = vector.load %arg3[%c0, %c0_0, %c0_1] : memref<1x8x512xf32, #tpu.memory_space<vmem>>, vector<1x8x512xf32>
    %1 = vector.shape_cast %0 : vector<1x8x512xf32> to vector<8x512xf32>
    %c0_2 = arith.constant 0 : index
    %c0_3 = arith.constant 0 : index
    %c0_4 = arith.constant 0 : index
    %2 = vector.load %arg2[%c0_2, %c0_3, %c0_4] : memref<1x8x512xf32, #tpu.memory_space<vmem>>, vector<1x8x512xf32>
    %3 = vector.shape_cast %2 : vector<1x8x512xf32> to vector<8x512xf32>
    %4 = tpu.concatenate %3, %1 in 0 : vector<8x512xf32>, vector<8x512xf32> -> vector<16x512xf32>
    %c0_5 = arith.constant 0 : index
    %c0_6 = arith.constant 0 : index
    %5 = vector.load %arg4[%c0_5, %c0_6] : memref<16x16xf32, #tpu.memory_space<vmem>>, vector<16x16xf32>
    %cst = arith.constant dense<0.000000e+00> : vector<16x512xf32>
    %6 = tpu.matmul %5, %4, %cst {dimension_numbers = #tpu.dot_dimension_numbers<[1], [0], [0], [1], [0, 0, 1, 1], [], []>} : vector<16x16xf32>, vector<16x512xf32>, vector<16x512xf32> -> vector<16x512xf32>
    %c0_7 = arith.constant 0 : index
    %c0_8 = arith.constant 0 : index
    %7 = vector.load %arg5[%c0_7, %c0_8] : memref<16x1xf32, #tpu.memory_space<vmem>>, vector<16x1xf32>
    %8 = vector.broadcast %7 : vector<16x1xf32> to vector<16x512xf32>
    %9 = arith.addf %6, %8 : vector<16x512xf32>
    %cst_9 = arith.constant 0.000000e+00 : f32
    %10 = vector.broadcast %cst_9 : f32 to vector<16x512xf32>
    %11 = arith.maximumf %9, %10 : vector<16x512xf32>
    %c0_10 = arith.constant 0 : index
    %c0_11 = arith.constant 0 : index
    %12 = vector.load %arg6[%c0_10, %c0_11] : memref<16x1xf32, #tpu.memory_space<vmem>>, vector<16x1xf32>
    %13 = vector.broadcast %12 : vector<16x1xf32> to vector<16x512xf32>
    %14 = arith.mulf %11, %13 : vector<16x512xf32>
    %cst_12 = arith.constant dense<0.000000e+00> : vector<512xf32>
    %15 = vector.multi_reduction <add>, %14, %cst_12 [0] : vector<16x512xf32> to vector<512xf32>
    %16 = vector.shape_cast %15 : vector<512xf32> to vector<1x512xf32>
    %c0_13 = arith.constant 0 : index
    %c0_14 = arith.constant 0 : index
    %17 = vector.load %arg7[%c0_13, %c0_14] : memref<1x1xf32, #tpu.memory_space<vmem>>, vector<1x1xf32>
    %18 = vector.broadcast %17 : vector<1x1xf32> to vector<1x512xf32>
    %19 = arith.addf %16, %18 : vector<1x512xf32>
    %20 = arith.negf %19 : vector<1x512xf32>
    %21 = math.exp %20 : vector<1x512xf32>
    %cst_15 = arith.constant 1.000000e+00 : f32
    %22 = vector.broadcast %cst_15 : f32 to vector<1x512xf32>
    %23 = arith.addf %22, %21 : vector<1x512xf32>
    %24 = arith.divf %22, %23 : vector<1x512xf32>
    %25 = vector.broadcast %24 : vector<1x512xf32> to vector<8x512xf32>
    %26 = arith.mulf %1, %25 : vector<8x512xf32>
    %c0_16 = arith.constant 0 : index
    %c0_17 = arith.constant 0 : index
    %c0_18 = arith.constant 0 : index
    %27 = vector.load %arg8[%c0_16, %c0_17, %c0_18] : memref<1x8x512xf32, #tpu.memory_space<vmem>>, vector<1x8x512xf32>
    %28 = vector.shape_cast %27 : vector<1x8x512xf32> to vector<8x512xf32>
    %29 = vector.shape_cast %26 : vector<8x512xf32> to vector<1x8x512xf32>
    tpu.vector_store %arg8[%c0_16, %c0_17, %c0_18], %29 {strides = array<i32>} : memref<1x8x512xf32, #tpu.memory_space<vmem>>, vector<1x8x512xf32>,
    return
  }
  func.func @transform_0(%arg0: i32, %arg1: i32) -> (i32, i32, i32) {
    %c0_i32 = arith.constant 0 : i32
    %c0_i32_0 = arith.constant 0 : i32
    return %arg0, %c0_i32, %arg1 : i32, i32, i32
  }
  func.func @transform_1(%arg0: i32, %arg1: i32) -> (i32, i32, i32) {
    %c0_i32 = arith.constant 0 : i32
    %c0_i32_0 = arith.constant 0 : i32
    return %arg0, %c0_i32, %arg1 : i32, i32, i32
  }
  func.func @transform_2(%arg0: i32, %arg1: i32) -> (i32, i32) {
    %c0_i32 = arith.constant 0 : i32
    %c0_i32_0 = arith.constant 0 : i32
    %c0_i32_1 = arith.constant 0 : i32
    return %c0_i32, %c0_i32_0 : i32, i32
  }
  func.func @transform_3(%arg0: i32, %arg1: i32) -> (i32, i32) {
    %c0_i32 = arith.constant 0 : i32
    %c0_i32_0 = arith.constant 0 : i32
    %c0_i32_1 = arith.constant 0 : i32
    return %c0_i32, %c0_i32_0 : i32, i32
  }
  func.func @transform_4(%arg0: i32, %arg1: i32) -> (i32, i32) {
    %c0_i32 = arith.constant 0 : i32
    %c0_i32_0 = arith.constant 0 : i32
    %c0_i32_1 = arith.constant 0 : i32
    return %c0_i32, %c0_i32_0 : i32, i32
  }
  func.func @transform_5(%arg0: i32, %arg1: i32) -> (i32, i32) {
    %c0_i32 = arith.constant 0 : i32
    %c0_i32_0 = arith.constant 0 : i32
    %c0_i32_1 = arith.constant 0 : i32
    return %c0_i32, %c0_i32_0 : i32, i32
  }
  func.func @transform_6(%arg0: i32, %arg1: i32) -> (i32, i32, i32) {
    %c0_i32 = arith.constant 0 : i32
    %c0_i32_0 = arith.constant 0 : i32
    return %arg0, %c0_i32, %arg1 : i32, i32, i32
  }
}

</mosaic_0001>

<bundles_post_ra>
// kernel: attention_block.1
= control target key start
LH: loop header
LB: loop body
LE: loop exit
PB: predicated region body
PF: predicated region fallthrough
CT: control target
= control target key end

     0   :  { %s851_s23 = smov 0   ;;  %s853_s24 = smov 0   ;;  %s930_s0 = inlined_call_operand.vmem [shape: f32[2,8,512], index: 0, kind: input, shape index: {}]   ;;  %s931_s1 = inlined_call_operand.vmem [shape: f32[2,8,512], index: 1, kind: input, shape index: {}]   ;;  %s932_s2 = inlined_call_operand.vmem [shape: f32[16,16], index: 2, kind: input, shape index: {}]   ;;  %s933_s3 = inlined_call_operand.vmem [shape: f32[16,1], index: 3, kind: input, shape index: {}]   ;;  %s934_s4 = inlined_call_operand.vmem [shape: f32[16,1], index: 4, kind: input, shape index: {}]   ;;  %s935_s5 = inlined_call_operand.<no memory space> [shape: f32[1,1], index: 5, kind: input, shape index: {}]   ;;  %s936_s6 = inlined_call_operand.vmem [shape: f32[2,8,512], index: 6, kind: output, shape index: {}]  }
   0x1   :  { %v11_v0 = vstv %s935_s5  ;;  %s855_s25 = smov 0  }
   0x2   :  { %12 = vst [vmem:[#allocation2] sm:$0x1] %v11_v0 }
   0x3 LB: > { %s30_s5 = sadd.s32 1, %s805_s24  ;;  %p723_p0 = scmp.ge.s32.totalorder %s809_s25, 1  ;;  %s809_s25 = sphi %s855_s25, %s18_s25   ;;  %s805_s24 = sphi %s853_s24, %s938_s24   ;;  %s801_s23 = sphi %s851_s23, %s937_s23  }
   0x4   : > { %p32_p1 = scmp.ge.s32.totalorder %s30_s5, 2  ;;  %p252_p2 = scmp.lt.s32.totalorder %s809_s25, 3 }
   0x6   : > { %s940_s5 = smov (%p32_p1, %s30_s5), 0  ;;  %p253_p3 = pnand %p723_p0, %p252_p2 }
   0x7   : > { %p300_p4 = scmp.lt.s32.totalorder (!%p253_p3), %s801_s23, 1 }
   0x8   : > { %256 = sbr.rel (%p253_p3) target bundleno = 278 (0x116), region = 44 }
   0xd   : > { %v811_v1 = vmov 0.0   ;;  %v339_v2 = vld [vmem:[%s933_s3] sm:$0xff]  ;;  %s942_s23 = smov (!%p300_p4, %s801_s23), 1  ;;  %v812_v4 = vmov 0   ;;  %vm351_vm0 = vcmask 130048   ;;  %v340_v14 = vld [vmem:[%s933_s3 + $0x8] sm:$0xff]  ;;  %v574_v54 = vlaneseq }
   0xe   : > { %422 = vmatprep.mubr.f32.mxu0 %v811_v1  ;;  %499 = vmatprep.mubr.f32.mxu1 %v811_v1  ;;  %v520_v3 = vld [vmem:[%s934_s4] sm:$0xff]  ;;  %s875_s30 = sshll.u32 %s942_s23, 5  ;;  %v521_v15 = vld [vmem:[%s934_s4 + $0x8] sm:$0xff] }
   0xf   : > { %769 = vset.pattern.permute.xlu0 %v812_v4  ;;  %770 = vset.pattern.permute.xlu1 %v812_v4  ;;  %s317_s9 = scalar_lea.vmem %s931_s1, %s875_s30  ;;  %s307_s12 = scalar_lea.vmem %s930_s0, %s875_s30  ;;  %v337_v13 = vld [vmem:[%s932_s2] sm:$0xff]  ;;  %v338_v16 = vld [vmem:[%s932_s2 + $0x8] sm:$0xff]  ;;  %v575_v63 = vshrl.u32 %v574_v54, 7 }
  0x10   : > { %343 = vperm.xlu0 %769, %v339_v2   ;;  %524 = vperm.xlu1 %770, %v520_v3   ;;  %v881_v5 = vld [vmem:[%s317_s9 + $0x8] sm:$0xff]  ;;  %v883_v6 = vld [vmem:[%s317_s9 + $0x18] sm:$0xff]  ;;  %v885_v7 = vld [vmem:[%s317_s9] sm:$0xff]  ;;  %s327_s23 = scalar_lea.vmem %s936_s6, %s875_s30 }
  0x11   : > { %386 = vmatprep.subr.mxu0 %v881_v5  ;;  %463 = vmatprep.subr.mxu1 %v883_v6  ;;  %v893_v8 = vld [vmem:[%s317_s9 + $0x10] sm:$0xff]  ;;  %v334_v9 = vld [vmem:[%s307_s12 + $0x8] sm:$0xff]  ;;  %v336_v10 = vld [vmem:[%s307_s12 + $0x18] sm:$0xff] }
  0x12   : > { %387 = vmatpush1.msra.mxu0 %v885_v7  ;;  %464 = vmatpush1.msra.mxu1 %v893_v8  ;;  %v333_v11 = vld [vmem:[%s307_s12] sm:$0xff]  ;;  %v335_v12 = vld [vmem:[%s307_s12 + $0x10] sm:$0xff] }
  0x13   : > { %388 = vmatprep.subr.mxu0 %v334_v9  ;;  %465 = vmatprep.subr.mxu1 %v336_v10  ;;  %v568_v17 = vld [vmem:[#allocation2] sm:$0x1] }
  0x14   : > { %389 = vmatpush1.msra.mxu0 %v333_v11  ;;  %466 = vmatpush1.msra.mxu1 %v335_v12  ;;  %v576_v12 = vsub.s32 0, %v575_v63 }
  0x15   : > { %730 = vmatmul.mubr.msk.f32.vlgmr.msra.gmra.mxu0 %vm351_vm0, %v337_v13  ;;  %732 = vmatmul.mubr.msk.f32.vlgmr.msra.gmra.mxu1 %vm351_vm0, %v337_v13 }
  0x16   : > { %428 = vmatprep.mubr.f32.mxu0 %v811_v1  ;;  %505 = vmatprep.mubr.f32.mxu1 %v811_v1 }
  0x17   : > { %348 = vperm.xlu0 %769, %v340_v14   ;;  %529 = vperm.xlu1 %770, %v521_v15  }
  0x19   : > { %731 = vmatmul.mubr.msk.f32.gmra.mxu0 %vm351_vm0, %v338_v16  ;;  %733 = vmatmul.mubr.msk.f32.gmra.mxu1 %vm351_vm0, %v338_v16 }
  0x1b   : > { %571 = vperm.xlu0 %769, %v568_v17  }
  0x8b   : > { %v344_v18 = vpop.permute.xlu0 %343  ;;  %v525_v25 = vpop.permute.xlu1 %524 }
  0x92   : > { %v349_v30 = vpop.permute.xlu0 %348  ;;  %v530_v43 = vpop.permute.xlu1 %529 }
  0x96   : > { %v572_v15 = vpop.permute.xlu0 %571 }
  0xd5   : > { %v424_v19 = vpop.f32.mrf.mxu0  ;;  %v501_v20 = vpop.f32.mrf.mxu1 }
  0xd6   : > { %v425_v21 = vadd.f32 %v424_v19, %v344_v18  ;;  %v502_v22 = vadd.f32 %v501_v20, %v344_v18 }
  0xd7   : > { %v426_v23 = vpop.f32.mrf.mxu0  ;;  %v503_v24 = vpop.f32.mrf.mxu1 }
  0xd8   : > { %v427_v26 = vadd.f32 %v426_v23, %v344_v18  ;;  %v504_v27 = vadd.f32 %v503_v24, %v344_v18  ;;  %v512_v31 = vmax.f32 %v425_v21, 0.0  ;;  %v514_v32 = vmax.f32 %v502_v22, 0.0 }
  0xd9   : > { %v430_v28 = vpop.f32.mrf.mxu0  ;;  %v507_v29 = vpop.f32.mrf.mxu1  ;;  %v577_v22 = vrot.slane %v572_v15, %v576_v12 }
  0xda   : > { %v431_v33 = vadd.f32 %v430_v28, %v349_v30  ;;  %v508_v34 = vadd.f32 %v507_v29, %v349_v30  ;;  %v513_v37 = vmax.f32 %v427_v26, 0.0  ;;  %v515_v38 = vmax.f32 %v504_v27, 0.0 }
  0xdb   : > { %v432_v35 = vpop.f32.mrf.mxu0  ;;  %v509_v36 = vpop.f32.mrf.mxu1  ;;  %v532_v46 = vmul.f32 %v525_v25, %v512_v31  ;;  %v534_v47 = vmul.f32 %v525_v25, %v514_v32 }
  0xdc   : > { %v433_v39 = vadd.f32 %v432_v35, %v349_v30  ;;  %v510_v40 = vadd.f32 %v509_v36, %v349_v30  ;;  %v516_v41 = vmax.f32 %v431_v33, 0.0  ;;  %v518_v42 = vmax.f32 %v508_v34, 0.0 }
  0xdd   : > { %v533_v50 = vmul.f32 %v525_v25, %v513_v37  ;;  %v535_v51 = vmul.f32 %v525_v25, %v515_v38 }
  0xde   : > { %v517_v44 = vmax.f32 %v433_v39, 0.0  ;;  %v519_v45 = vmax.f32 %v510_v40, 0.0  ;;  %v536_v48 = vmul.f32 %v530_v43, %v516_v41  ;;  %v538_v49 = vmul.f32 %v530_v43, %v518_v42 }
  0xe0   : > { %v537_v52 = vmul.f32 %v530_v43, %v517_v44  ;;  %v539_v53 = vmul.f32 %v530_v43, %v519_v45  ;;  %v540_v55 = vadd.f32 %v536_v48, %v532_v46  ;;  %v554_v56 = vadd.f32 %v538_v49, %v534_v47 }
  0xe2   : > { %v547_v57 = vadd.f32 %v537_v52, %v533_v50  ;;  %v561_v58 = vadd.f32 %v539_v53, %v535_v51  ;;  %v541_v59 = vrot.slane %v540_v55, 4  ;;  %v555_v60 = vrot.slane %v554_v56, 4 }
  0xe4   : > { %v548_v61 = vrot.slane %v547_v57, 4  ;;  %v562_v62 = vrot.slane %v561_v58, 4  ;;  %v542_v0 = vadd.f32 %v541_v59, %v540_v55  ;;  %v556_v1 = vadd.f32 %v555_v60, %v554_v56 }
  0xe6   : > { %v549_v2 = vadd.f32 %v548_v61, %v547_v57  ;;  %v563_v3 = vadd.f32 %v562_v62, %v561_v58  ;;  %v543_v4 = vrot.slane %v542_v0, 2  ;;  %v557_v9 = vrot.slane %v556_v1, 2 }
  0xe8   : > { %v550_v10 = vrot.slane %v549_v2, 2  ;;  %v564_v11 = vrot.slane %v563_v3, 2  ;;  %v544_v13 = vadd.f32 %v543_v4, %v542_v0  ;;  %v558_v14 = vadd.f32 %v557_v9, %v556_v1 }
  0xea   : > { %v551_v16 = vadd.f32 %v550_v10, %v549_v2  ;;  %v565_v17 = vadd.f32 %v564_v11, %v563_v3  ;;  %v545_v18 = vrot.slane %v544_v13, 1  ;;  %v559_v19 = vrot.slane %v558_v14, 1 }
  0xec   : > { %v552_v20 = vrot.slane %v551_v16, 1  ;;  %v566_v21 = vrot.slane %v565_v17, 1  ;;  %v546_v23 = vadd.f32 %v545_v18, %v544_v13  ;;  %v560_v24 = vadd.f32 %v559_v19, %v558_v14 }
  0xee   : > { %v553_v25 = vadd.f32 %v552_v20, %v551_v16  ;;  %v567_v26 = vadd.f32 %v566_v21, %v565_v17  ;;  %v578_v27 = vadd.f32 %v577_v22, %v546_v23  ;;  %v580_v28 = vadd.f32 %v577_v22, %v560_v24 }
  0xf0   : > { %v579_v29 = vadd.f32 %v577_v22, %v553_v25  ;;  %v581_v30 = vadd.f32 %v577_v22, %v567_v26  ;;  %v734_v31 = vmul.f32 -1.442695, %v578_v27  ;;  %v736_v32 = vmul.f32 -1.442695, %v580_v28 }
  0xf2   : > { %v735_v33 = vmul.f32 -1.442695, %v579_v29  ;;  %v737_v34 = vmul.f32 -1.442695, %v581_v30  ;;  %771 = vpow2.f32 %v734_v31 }
  0xf3   : > { %773 = vpow2.f32 %v736_v32 }
  0xf4   : > { %775 = vpow2.f32 %v735_v33 }
  0xf5   : > { %777 = vpow2.f32 %v737_v34 }
  0xff   : > { %v772_v35 = vpop.eup %771 }
 0x100   : > { %v774_v36 = vpop.eup %773  ;;  %v594_v37 = vadd.f32 1.0, %v772_v35 }
 0x101   : > { %v776_v38 = vpop.eup %775  ;;  %v596_v39 = vadd.f32 1.0, %v774_v36 }
 0x102   : > { %v778_v40 = vpop.eup %777  ;;  %779 = vrcp.f32 %v594_v37  ;;  %v595_v41 = vadd.f32 1.0, %v776_v38 }
 0x103   : > { %781 = vrcp.f32 %v596_v39  ;;  %v597_v42 = vadd.f32 1.0, %v778_v40 }
 0x104   : > { %783 = vrcp.f32 %v595_v41 }
 0x105   : > { %785 = vrcp.f32 %v597_v42 }
 0x10f   : > { %v780_v43 = vpop.eup %779 }
 0x110   : > { %v782_v44 = vpop.eup %781  ;;  %v606_v45 = vmul.f32 %v780_v43, %v885_v7 }
 0x111   : > { %v784_v46 = vpop.eup %783  ;;  %v608_v47 = vmul.f32 %v782_v44, %v893_v8 }
 0x112   : > { %v786_v48 = vpop.eup %785  ;;  %610 = vst [vmem:[%s327_s23] sm:$0xff] %v606_v45  ;;  %v607_v49 = vmul.f32 %v784_v46, %v881_v5 }
 0x113   : > { %612 = vst [vmem:[%s327_s23 + $0x10] sm:$0xff] %v608_v47  ;;  %v609_v50 = vmul.f32 %v786_v48, %v883_v6 }
 0x114   : > { %611 = vst [vmem:[%s327_s23 + $0x8] sm:$0xff] %v607_v49 }
 0x115   : > { %613 = vst [vmem:[%s327_s23 + $0x18] sm:$0xff] %v609_v50 }
 0x116 PF: > { %s18_s25 = sadd.s32 1, %s809_s25   ;;  %s937_s23 = smov %s805_s24 }
 0x117   : > { %p15_p5 = scmp.ge.s32.totalorder %s18_s25, 4   ;;  %s938_s24 = smov %s940_s5 }
 0x119   :  { %17 = sbr.rel (!%p15_p5) target bundleno = 3 (0x3), region = 77 }

</bundles_post_ra>
